<compile_context>
chip_gen: v7x
topology: tpu7x:2x2x1
jax: 0.10.0
libtpu: 0.0.40
codegen_flags: <defaults>
</compile_context>

<pallas_src>
import math

import jax
import jax.numpy as jnp
from jax.experimental import pallas as pl
from jax.experimental.pallas import tpu as pltpu


def _round_up(x, m):
    return (x + m - 1) // m * m


def _pad2d(a, rows, cols, dtype):
    """Zero-pad a 2D array to (rows, cols) and cast; no copy if already OK."""
    if a.shape == (rows, cols) and a.dtype == dtype:
        return a
    out = jnp.zeros((rows, cols), dtype)
    return out.at[: a.shape[0], : a.shape[1]].set(a.astype(dtype))


def _discriminator_kernel(x_ref, we_ref, be_ref, w1_ref, b1_ref, w2_ref, b2_ref,
                          o_ref, acc_ref):
    # grid = (batch_tile i, encoder-K tile k); k is the (last) reduction axis.
    k = pl.program_id(1)

    @pl.when(k == 0)
    def _init():
        acc_ref[...] = jnp.zeros_like(acc_ref)

    # ---- stand-in encoder matmul partial sum: bf16 operands, f32 accumulate ----
    acc_ref[...] += jnp.dot(x_ref[...], we_ref[...],
                            preferred_element_type=jnp.float32)

    @pl.when(k == pl.num_programs(1) - 1)
    def _finalize():
        # encoder bias + LeakyReLU(0.01), all f32
        h = acc_ref[...] + be_ref[...]
        h = jnp.where(h > 0, h, 0.01 * h)

        # dense head (lane-padded to 128 in the wrapper, so both matmuls and
        # the final store are lane-dense, resident weights fetched once)
        h1 = jnp.dot(h, w1_ref[...], preferred_element_type=jnp.float32) + b1_ref[...]
        h1 = jnp.where(h1 > 0, h1, 0.01 * h1)

        z = jnp.dot(h1, w2_ref[...], preferred_element_type=jnp.float32) + b2_ref[...]

        # numerically stable sigmoid with a single EUP exp:
        #   e = exp(-|z|);  sigmoid(z) = (z>=0 ? 1 : e) / (1 + e)
        e = jnp.exp(-jnp.abs(z))
        num = jnp.where(z >= 0, 1.0, e)
        o_ref[...] = num / (1.0 + e)


def discriminator_forward(x_nchw, params, *, tb=256, tk=1024):
    """x_nchw: (B, C, H, W) float32. Returns (B, 1) float32 in (0, 1)."""
    we, be, w1, b1, w2, b2 = params
    B = x_nchw.shape[0]
    D = int(math.prod(x_nchw.shape[1:]))
    C = we.shape[1]          # encoder.max_channels
    half = w1.shape[1]       # channels // 2

    # ---- layout plumbing in plain JAX: flatten + pad to TPU-friendly shapes ----
    x_flat = x_nchw.reshape(B, D)

    # batch tiling (sublane axis): multiple of 8, tile tb
    tb = _round_up(min(tb, _round_up(B, 8)), 8)
    B_pad = _round_up(B, tb)

    # encoder reduction tiling (lane axis of x): multiple of 128, tile tk
    tk = _round_up(min(tk, _round_up(D, 128)), 128)
    D_pad = _round_up(D, tk)

    C_PAD = _round_up(C, 128)
    H_PAD = _round_up(half, 128)
    OUT_PAD = 128  # lane-dense output slab; real logit lives in column 0

    f32 = jnp.float32
    bf16 = jnp.bfloat16

    # streamed operands in bf16 (halves HBM bytes); zero-padding is exact
    x_p = _pad2d(x_flat, B_pad, D_pad, bf16)
    we_p = _pad2d(we, D_pad, C_PAD, bf16)
    # small resident head tensors stay f32
    be_p = _pad2d(be, 1, C_PAD, f32)
    w1_p = _pad2d(w1, C_PAD, H_PAD, f32)
    b1_p = _pad2d(b1, 1, H_PAD, f32)
    w2_p = _pad2d(w2, H_PAD, OUT_PAD, f32)
    b2_p = _pad2d(b2, 1, OUT_PAD, f32)

    grid = (B_pad // tb, D_pad // tk)

    out_padded = pl.pallas_call(
        _discriminator_kernel,
        out_shape=jax.ShapeDtypeStruct((B_pad, OUT_PAD), f32),
        grid_spec=pltpu.PrefetchScalarGridSpec(
            num_scalar_prefetch=0,
            grid=grid,
            in_specs=[
                pl.BlockSpec((tb, tk), lambda i, k: (i, k)),          # x tile (streamed)
                pl.BlockSpec((tk, C_PAD), lambda i, k: (k, 0)),       # encoder W tile (streamed)
                pl.BlockSpec((1, C_PAD), lambda i, k: (0, 0)),        # encoder b (resident)
                pl.BlockSpec((C_PAD, H_PAD), lambda i, k: (0, 0)),    # head W1 (resident)
                pl.BlockSpec((1, H_PAD), lambda i, k: (0, 0)),        # head b1 (resident)
                pl.BlockSpec((H_PAD, OUT_PAD), lambda i, k: (0, 0)),  # head W2 (resident)
                pl.BlockSpec((1, OUT_PAD), lambda i, k: (0, 0)),      # head b2 (resident)
            ],
            out_specs=pl.BlockSpec((tb, OUT_PAD), lambda i, k: (i, 0)),
            scratch_shapes=[pltpu.VMEM((tb, C_PAD), jnp.float32)],    # encoder accumulator
        ),
        compiler_params=pltpu.CompilerParams(
            dimension_semantics=("parallel", "arbitrary")),
    )(x_p, we_p, be_p, w1_p, b1_p, w2_p, b2_p)

    # slice away batch padding and the lane padding of the scalar output
    return out_padded[:B, :1]


def init_params(key, in_dim, channels):
    """Deterministic init mimicking nn.Linear default (uniform +/- 1/sqrt(fan_in)).

    Weights are stored (in_features, out_features)."""
    half = math.floor(channels / 2)
    keys = jax.random.split(key, 6)

    def lin(kw, kb, fan_in, fan_out):
        bound = 1.0 / math.sqrt(fan_in)
        w = jax.random.uniform(kw, (fan_in, fan_out), jnp.float32, -bound, bound)
        b = jax.random.uniform(kb, (1, fan_out), jnp.float32, -bound, bound)
        return w, b

    we, be = lin(keys[0], keys[1], in_dim, channels)      # stand-in encoder
    w1, b1 = lin(keys[2], keys[3], channels, half)        # dense[0]
    w2, b2 = lin(keys[4], keys[5], half, 1)               # dense[2]
    return we, be, w1, b1, w2, b2


def _reference(x_nchw, params):
    we, be, w1, b1, w2, b2 = params
    xf = x_nchw.reshape(x_nchw.shape[0], -1)
    h = xf @ we + be
    h = jnp.where(h > 0, h, 0.01 * h)
    h1 = h @ w1 + b1
    h1 = jnp.where(h1 > 0, h1, 0.01 * h1)
    return jax.nn.sigmoid(h1 @ w2 + b2)


if __name__ == "__main__":
    key = jax.random.PRNGKey(0)
    k_x, k_p = jax.random.split(key)

    # Small shapes consistent with the module: NCHW image, encoder producing
    # max_channels features per example.
    B, C_in, H, W = 2, 4, 16, 16
    max_channels = 32
    D = C_in * H * W

    x = jax.random.normal(k_x, (B, C_in, H, W), dtype=jnp.float32)
    params = init_params(k_p, D, max_channels)

    out = jax.block_until_ready(discriminator_forward(x, params))
    assert out.shape == (B, 1), out.shape
    assert bool(jnp.all((out > 0.0) & (out < 1.0))), "sigmoid output out of range"

    # f32 reference; tolerance loosened for the bf16 streaming of x / encoder W.
    ref = _reference(x, params)
    assert bool(jnp.allclose(out, ref, atol=2e-2, rtol=0.0)), "mismatch vs reference"

    # Second check: batch not a multiple of the tile -> exercises batch tiling,
    # padding and the 'parallel' batch axis (2 batch tiles with tb=8).
    B2 = 10
    x2 = jax.random.normal(jax.random.PRNGKey(1), (B2, C_in, H, W), dtype=jnp.float32)
    out2 = jax.block_until_ready(discriminator_forward(x2, params, tb=8, tk=128))
    assert out2.shape == (B2, 1), out2.shape
    ref2 = _reference(x2, params)
    assert bool(jnp.allclose(out2, ref2, atol=2e-2, rtol=0.0)), "mismatch vs reference (tiled batch)"

    print("KERNEL_OK")
</pallas_src>

<mosaic_0001>
module attributes {stable_mosaic.version = 11 : i64} {
  func.func @_discriminator_kernel(%arg0: i32, %arg1: i32, %arg2: memref<8x1024xbf16, #tpu.memory_space<vmem>>, %arg3: memref<1024x128xbf16, #tpu.memory_space<vmem>>, %arg4: memref<1x128xf32, #tpu.memory_space<vmem>>, %arg5: memref<128x128xf32, #tpu.memory_space<vmem>>, %arg6: memref<1x128xf32, #tpu.memory_space<vmem>>, %arg7: memref<128x128xf32, #tpu.memory_space<vmem>>, %arg8: memref<1x128xf32, #tpu.memory_space<vmem>>, %arg9: memref<8x128xf32, #tpu.memory_space<vmem>>, %arg10: memref<8x128xf32, #tpu.memory_space<vmem>>) attributes {dimension_semantics = [#tpu.dimension_semantics<parallel>, #tpu.dimension_semantics<arbitrary>], iteration_bounds = array<i64: 1, 1>, scalar_prefetch = 0 : i64, scratch_operands = 1 : i64, tpu.core_type = #tpu.core_type<tc>, window_params = [{transform_indices = @transform_0, window_bounds = array<i64: 8, 1024>}, {transform_indices = @transform_1, window_bounds = array<i64: 1024, 128>}, {pipeline_mode = #tpu.pipeline_mode<synchronous>, transform_indices = @transform_2, window_bounds = array<i64: 1, 128>}, {pipeline_mode = #tpu.pipeline_mode<synchronous>, transform_indices = @transform_3, window_bounds = array<i64: 128, 128>}, {pipeline_mode = #tpu.pipeline_mode<synchronous>, transform_indices = @transform_4, window_bounds = array<i64: 1, 128>}, {pipeline_mode = #tpu.pipeline_mode<synchronous>, transform_indices = @transform_5, window_bounds = array<i64: 128, 128>}, {pipeline_mode = #tpu.pipeline_mode<synchronous>, transform_indices = @transform_6, window_bounds = array<i64: 1, 128>}, {transform_indices = @transform_7, window_bounds = array<i64: 8, 128>}]} {
    %c0_i32 = arith.constant 0 : i32
    %0 = arith.cmpi eq, %arg1, %c0_i32 : i32
    %1 = arith.extui %0 : i1 to i32
    %c0_i32_0 = arith.constant 0 : i32
    %2 = arith.cmpi ne, %1, %c0_i32_0 : i32
    scf.if %2 {
      %cst_10 = arith.constant 0.000000e+00 : f32
      %12 = vector.broadcast %cst_10 : f32 to vector<8x128xf32>
      %c0_11 = arith.constant 0 : index
      %c0_12 = arith.constant 0 : index
      %13 = vector.load %arg10[%c0_11, %c0_12] : memref<8x128xf32, #tpu.memory_space<vmem>>, vector<8x128xf32>
      tpu.vector_store %arg10[%c0_11, %c0_12], %12 {strides = array<i32>} : memref<8x128xf32, #tpu.memory_space<vmem>>, vector<8x128xf32>,
    } else {
    }
    %c0 = arith.constant 0 : index
    %c0_1 = arith.constant 0 : index
    %3 = vector.load %arg10[%c0, %c0_1] : memref<8x128xf32, #tpu.memory_space<vmem>>, vector<8x128xf32>
    %c0_2 = arith.constant 0 : index
    %c0_3 = arith.constant 0 : index
    %4 = vector.load %arg2[%c0_2, %c0_3] : memref<8x1024xbf16, #tpu.memory_space<vmem>>, vector<8x1024xbf16>
    %c0_4 = arith.constant 0 : index
    %c0_5 = arith.constant 0 : index
    %5 = vector.load %arg3[%c0_4, %c0_5] : memref<1024x128xbf16, #tpu.memory_space<vmem>>, vector<1024x128xbf16>
    %cst = arith.constant dense<0.000000e+00> : vector<8x128xf32>
    %6 = tpu.matmul %4, %5, %cst {dimension_numbers = #tpu.dot_dimension_numbers<[1], [0], [0], [1], [0, 0, 1, 1], [], []>} : vector<8x1024xbf16>, vector<1024x128xbf16>, vector<8x128xf32> -> vector<8x128xf32>
    %7 = arith.addf %3, %6 : vector<8x128xf32>
    %c0_6 = arith.constant 0 : index
    %c0_7 = arith.constant 0 : index
    %8 = vector.load %arg10[%c0_6, %c0_7] : memref<8x128xf32, #tpu.memory_space<vmem>>, vector<8x128xf32>
    tpu.vector_store %arg10[%c0_6, %c0_7], %7 {strides = array<i32>} : memref<8x128xf32, #tpu.memory_space<vmem>>, vector<8x128xf32>,
    %c0_i32_8 = arith.constant 0 : i32
    %9 = arith.cmpi eq, %arg1, %c0_i32_8 : i32
    %10 = arith.extui %9 : i1 to i32
    %c0_i32_9 = arith.constant 0 : i32
    %11 = arith.cmpi ne, %10, %c0_i32_9 : i32
    scf.if %11 {
      %c0_10 = arith.constant 0 : index
      %c0_11 = arith.constant 0 : index
      %12 = vector.load %arg10[%c0_10, %c0_11] : memref<8x128xf32, #tpu.memory_space<vmem>>, vector<8x128xf32>
      %c0_12 = arith.constant 0 : index
      %c0_13 = arith.constant 0 : index
      %13 = vector.load %arg4[%c0_12, %c0_13] : memref<1x128xf32, #tpu.memory_space<vmem>>, vector<1x128xf32>
      %14 = vector.broadcast %13 : vector<1x128xf32> to vector<8x128xf32>
      %15 = arith.addf %12, %14 : vector<8x128xf32>
      %cst_14 = arith.constant 0.000000e+00 : f32
      %16 = vector.broadcast %cst_14 : f32 to vector<8x128xf32>
      %17 = arith.cmpf ogt, %15, %16 : vector<8x128xf32>
      %cst_15 = arith.constant 0.00999999977 : f32
      %18 = vector.broadcast %cst_15 : f32 to vector<8x128xf32>
      %19 = arith.mulf %18, %15 : vector<8x128xf32>
      %20 = arith.select %17, %15, %19 : vector<8x128xi1>, vector<8x128xf32>
      %c0_16 = arith.constant 0 : index
      %c0_17 = arith.constant 0 : index
      %21 = vector.load %arg5[%c0_16, %c0_17] : memref<128x128xf32, #tpu.memory_space<vmem>>, vector<128x128xf32>
      %cst_18 = arith.constant dense<0.000000e+00> : vector<8x128xf32>
      %22 = tpu.matmul %20, %21, %cst_18 {dimension_numbers = #tpu.dot_dimension_numbers<[1], [0], [0], [1], [0, 0, 1, 1], [], []>} : vector<8x128xf32>, vector<128x128xf32>, vector<8x128xf32> -> vector<8x128xf32>
      %c0_19 = arith.constant 0 : index
      %c0_20 = arith.constant 0 : index
      %23 = vector.load %arg6[%c0_19, %c0_20] : memref<1x128xf32, #tpu.memory_space<vmem>>, vector<1x128xf32>
      %24 = vector.broadcast %23 : vector<1x128xf32> to vector<8x128xf32>
      %25 = arith.addf %22, %24 : vector<8x128xf32>
      %cst_21 = arith.constant 0.000000e+00 : f32
      %26 = vector.broadcast %cst_21 : f32 to vector<8x128xf32>
      %27 = arith.cmpf ogt, %25, %26 : vector<8x128xf32>
      %cst_22 = arith.constant 0.00999999977 : f32
      %28 = vector.broadcast %cst_22 : f32 to vector<8x128xf32>
      %29 = arith.mulf %28, %25 : vector<8x128xf32>
      %30 = arith.select %27, %25, %29 : vector<8x128xi1>, vector<8x128xf32>
      %c0_23 = arith.constant 0 : index
      %c0_24 = arith.constant 0 : index
      %31 = vector.load %arg7[%c0_23, %c0_24] : memref<128x128xf32, #tpu.memory_space<vmem>>, vector<128x128xf32>
      %cst_25 = arith.constant dense<0.000000e+00> : vector<8x128xf32>
      %32 = tpu.matmul %30, %31, %cst_25 {dimension_numbers = #tpu.dot_dimension_numbers<[1], [0], [0], [1], [0, 0, 1, 1], [], []>} : vector<8x128xf32>, vector<128x128xf32>, vector<8x128xf32> -> vector<8x128xf32>
      %c0_26 = arith.constant 0 : index
      %c0_27 = arith.constant 0 : index
      %33 = vector.load %arg8[%c0_26, %c0_27] : memref<1x128xf32, #tpu.memory_space<vmem>>, vector<1x128xf32>
      %34 = vector.broadcast %33 : vector<1x128xf32> to vector<8x128xf32>
      %35 = arith.addf %32, %34 : vector<8x128xf32>
      %36 = math.absf %35 : vector<8x128xf32>
      %cst_28 = arith.constant 0.000000e+00 : f32
      %37 = vector.broadcast %cst_28 : f32 to vector<8x128xf32>
      %38 = arith.subf %37, %36 : vector<8x128xf32>
      %39 = math.exp %38 : vector<8x128xf32>
      %cst_29 = arith.constant 0.000000e+00 : f32
      %40 = vector.broadcast %cst_29 : f32 to vector<8x128xf32>
      %41 = arith.cmpf oge, %35, %40 : vector<8x128xf32>
      %cst_30 = arith.constant 1.000000e+00 : f32
      %42 = vector.broadcast %cst_30 : f32 to vector<8x128xf32>
      %43 = arith.select %41, %42, %39 : vector<8x128xi1>, vector<8x128xf32>
      %cst_31 = arith.constant 1.000000e+00 : f32
      %44 = vector.broadcast %cst_31 : f32 to vector<8x128xf32>
      %45 = arith.addf %44, %39 : vector<8x128xf32>
      %46 = arith.divf %43, %45 : vector<8x128xf32>
      %c0_32 = arith.constant 0 : index
      %c0_33 = arith.constant 0 : index
      %47 = vector.load %arg9[%c0_32, %c0_33] : memref<8x128xf32, #tpu.memory_space<vmem>>, vector<8x128xf32>
      tpu.vector_store %arg9[%c0_32, %c0_33], %46 {strides = array<i32>} : memref<8x128xf32, #tpu.memory_space<vmem>>, vector<8x128xf32>,
    } else {
    }
    return
  }
  func.func @transform_0(%arg0: i32, %arg1: i32) -> (i32, i32) {
    %c0_i32 = arith.constant 0 : i32
    return %arg0, %arg1 : i32, i32
  }
  func.func @transform_1(%arg0: i32, %arg1: i32) -> (i32, i32) {
    %c0_i32 = arith.constant 0 : i32
    %c0_i32_0 = arith.constant 0 : i32
    return %arg1, %c0_i32 : i32, i32
  }
  func.func @transform_2(%arg0: i32, %arg1: i32) -> (i32, i32) {
    %c0_i32 = arith.constant 0 : i32
    %c0_i32_0 = arith.constant 0 : i32
    %c0_i32_1 = arith.constant 0 : i32
    return %c0_i32, %c0_i32_0 : i32, i32
  }
  func.func @transform_3(%arg0: i32, %arg1: i32) -> (i32, i32) {
    %c0_i32 = arith.constant 0 : i32
    %c0_i32_0 = arith.constant 0 : i32
    %c0_i32_1 = arith.constant 0 : i32
    return %c0_i32, %c0_i32_0 : i32, i32
  }
  func.func @transform_4(%arg0: i32, %arg1: i32) -> (i32, i32) {
    %c0_i32 = arith.constant 0 : i32
    %c0_i32_0 = arith.constant 0 : i32
    %c0_i32_1 = arith.constant 0 : i32
    return %c0_i32, %c0_i32_0 : i32, i32
  }
  func.func @transform_5(%arg0: i32, %arg1: i32) -> (i32, i32) {
    %c0_i32 = arith.constant 0 : i32
    %c0_i32_0 = arith.constant 0 : i32
    %c0_i32_1 = arith.constant 0 : i32
    return %c0_i32, %c0_i32_0 : i32, i32
  }
  func.func @transform_6(%arg0: i32, %arg1: i32) -> (i32, i32) {
    %c0_i32 = arith.constant 0 : i32
    %c0_i32_0 = arith.constant 0 : i32
    %c0_i32_1 = arith.constant 0 : i32
    return %c0_i32, %c0_i32_0 : i32, i32
  }
  func.func @transform_7(%arg0: i32, %arg1: i32) -> (i32, i32) {
    %c0_i32 = arith.constant 0 : i32
    %c0_i32_0 = arith.constant 0 : i32
    return %arg0, %c0_i32 : i32, i32
  }
}

</mosaic_0001>

<bundles_post_ra>
// kernel: tpu_custom_call.1
= control target key start
LH: loop header
LB: loop body
LE: loop exit
PB: predicated region body
PF: predicated region fallthrough
CT: control target
= control target key end

     0   :  { %12 = vsyncpa [#allocation4], 0  ;;  %s1682_s0 = inlined_call_operand.hbm [shape: bf16[8,1024], index: 0, kind: input, shape index: {}]   ;;  %s1683_s1 = inlined_call_operand.hbm [shape: bf16[1024,128], index: 1, kind: input, shape index: {}]   ;;  %s1684_s2 = inlined_call_operand.vmem [shape: f32[1,128], index: 2, kind: input, shape index: {}]   ;;  %s1685_s3 = inlined_call_operand.hbm [shape: f32[128,128], index: 3, kind: input, shape index: {}]   ;;  %s1686_s4 = inlined_call_operand.vmem [shape: f32[1,128], index: 4, kind: input, shape index: {}]   ;;  %s1687_s5 = inlined_call_operand.hbm [shape: f32[128,128], index: 5, kind: input, shape index: {}]   ;;  %s1688_s6 = inlined_call_operand.vmem [shape: f32[1,128], index: 6, kind: input, shape index: {}]   ;;  %s1689_s7 = inlined_call_operand.hbm [shape: f32[8,128], index: 7, kind: output, shape index: {}]  }
   0x1   :  { %13 = vsyncpa [#allocation7], 0 }
   0x2   :  { %14 = vsyncpa [#allocation10], 0 }
   0x3   :  { %15 = vsyncpa [#allocation5], 0  ;;  %s1545_s24 = smov [#allocation6]   ;;  %s1427_s28 = scalar_lea.hbm %s1683_s1, 8192 }
   0x4   :  { %s31_s25 = sshll.u32 %s1545_s24, 4  ;;  %p1428_p0 = scmp.ne.s32.totalorder %s1683_s1, %s1427_s28  ;;  %s32_s25 = int_to_ptr.vmem [resolvable:$true] %s31_s25 }
   0x5   :  { %p1431_p1 = scmp.lt.u32.totalorder %s1427_s28, %s1683_s1 }
   0x7   :  { %p1433_p2 = pnand %p1431_p1, %p1428_p0 }
   0x9   :  { %1436 = shalt.err (!%p1433_p2)
}
   0xa   :  { %s1437_s10 = scalar_lea.vmem %s32_s25, 8192  ;;  %p1442_p4 = scmp.lt.s32.totalorder %s32_s25, %s32_s25 }
   0xb   :  { %p1438_p3 = scmp.ne.s32.totalorder %s32_s25, %s1437_s10  ;;  %p1443_p5 = scmp.lt.s32.totalorder %s1437_s10, %s1437_s10 }
   0xd   :  { %p1444_p6 = por %p1443_p5, %p1442_p4 }
   0xf   :  { %p1445_p7 = pnand %p1444_p6, %p1438_p3 }
  0x11   :  { %1448 = shalt.err (!%p1445_p7)
}
  0x12   :  { %s1546_s11 = smov 64   ;;  %s1547_s12 = smov 4  }
  0x13   :  { %37 = dma.hbm_to_vmem [thread:$0]  %s1683_s1, 8192, %s32_s25, [#allocation7], %s1546_s11, %s1546_s11, %s1547_s12  }
  0x14   :  { %s1548_s15 = smov [#allocation3]   ;;  %s1549_s17 = smov [#allocation8]  }
  0x15   :  { %s22_s16 = sshll.u32 %s1548_s15, 4  ;;  %s45_s18 = sshll.u32 %s1549_s17, 4  ;;  %s23_s16 = int_to_ptr.vmem [resolvable:$true] %s22_s16  ;;  %s46_s18 = int_to_ptr.vmem [resolvable:$true] %s45_s18 }
  0x16   :  { %s1449_s21 = scalar_lea.hbm %s1682_s0, 512 }
  0x17   :  { %p1450_p8 = scmp.ne.s32.totalorder %s1682_s0, %s1449_s21  ;;  %p1453_p9 = scmp.lt.u32.totalorder %s1449_s21, %s1682_s0 }
  0x19   :  { %p1455_p10 = pnand %p1453_p9, %p1450_p8 }
  0x1b   :  { %1458 = shalt.err (!%p1455_p10)
}
  0x1c   :  { %s1459_s1 = scalar_lea.vmem %s23_s16, 512  ;;  %p1464_p12 = scmp.lt.s32.totalorder %s23_s16, %s23_s16 }
  0x1d   :  { %p1460_p11 = scmp.ne.s32.totalorder %s23_s16, %s1459_s1  ;;  %p1465_p13 = scmp.lt.s32.totalorder %s1459_s1, %s1459_s1 }
  0x1f   :  { %p1466_p0 = por %p1465_p13, %p1464_p12 }
  0x21   :  { %p1467_p1 = pnand %p1466_p0, %p1460_p11 }
  0x23   :  { %1470 = shalt.err (!%p1467_p1)
}
  0x24   :  { %25 = dma.hbm_to_vmem [thread:$0]  %s1682_s0, 512, %s23_s16, [#allocation4]  }
  0x25   :  { %s1471_s30 = scalar_lea.hbm %s1685_s3, 2048 }
  0x26   :  { %p1472_p2 = scmp.ne.s32.totalorder %s1685_s3, %s1471_s30  ;;  %p1475_p3 = scmp.lt.u32.totalorder %s1471_s30, %s1685_s3 }
  0x28   :  { %p1477_p4 = pnand %p1475_p3, %p1472_p2 }
  0x2a   :  { %1480 = shalt.err (!%p1477_p4)
}
  0x2b   :  { %s1481_s12 = scalar_lea.vmem %s46_s18, 2048  ;;  %p1486_p6 = scmp.lt.s32.totalorder %s46_s18, %s46_s18 }
  0x2c   :  { %p1482_p5 = scmp.ne.s32.totalorder %s46_s18, %s1481_s12  ;;  %p1487_p7 = scmp.lt.s32.totalorder %s1481_s12, %s1481_s12 }
  0x2e   :  { %p1488_p8 = por %p1487_p7, %p1486_p6 }
  0x30   :  { %p1489_p9 = pnand %p1488_p8, %p1482_p5 }
  0x32   :  { %1492 = shalt.err (!%p1489_p9)
}
  0x33   :  { %s1550_s0 = smov 128   ;;  %s1551_s13 = smov 8  }
  0x34   :  { %51 = dma.hbm_to_vmem [thread:$0]  %s1685_s3, 2048, %s46_s18, [#allocation7], %s1550_s0, %s1550_s0, %s1551_s13  }
  0x35   :  { %s1552_s16 = smov [#allocation9]   ;;  %s1493_s21 = scalar_lea.hbm %s1687_s5, 2048 }
  0x36   :  { %s59_s17 = sshll.u32 %s1552_s16, 4  ;;  %p1494_p10 = scmp.ne.s32.totalorder %s1687_s5, %s1493_s21  ;;  %s60_s17 = int_to_ptr.vmem [resolvable:$true] %s59_s17 }
  0x37   :  { %p1497_p11 = scmp.lt.u32.totalorder %s1493_s21, %s1687_s5 }
  0x39   :  { %p1499_p12 = pnand %p1497_p11, %p1494_p10 }
  0x3b   :  { %1502 = shalt.err (!%p1499_p12)
}
  0x3c   :  { %s1503_s1 = scalar_lea.vmem %s60_s17, 2048  ;;  %p1508_p0 = scmp.lt.s32.totalorder %s60_s17, %s60_s17 }
  0x3d   :  { %p1504_p13 = scmp.ne.s32.totalorder %s60_s17, %s1503_s1  ;;  %p1509_p1 = scmp.lt.s32.totalorder %s1503_s1, %s1503_s1 }
  0x3f   :  { %p1510_p2 = por %p1509_p1, %p1508_p0 }
  0x41   :  { %p1511_p3 = pnand %p1510_p2, %p1504_p13 }
  0x43   :  { %1514 = shalt.err (!%p1511_p3)
}
  0x44   :  { %65 = dma.hbm_to_vmem [thread:$0]  %s1687_s5, 2048, %s60_s17, [#allocation10], %s1550_s0, %s1550_s0, %s1551_s13  }
  0x45   :  { %1537 = dma.done.wait [#allocation4], 512  }
  0x46   :  { %1538 = vsyncadd [#allocation4], 4294966784 }
  0x47   :  { %1539 = dma.done.wait [#allocation7], 10240  }
  0x48   :  { %1540 = vsyncadd [#allocation7], 4294957056 }
  0x49   :  { %1541 = dma.done.wait [#allocation10], 2048  }
  0x4a   :  { %1542 = vsyncadd [#allocation10], 4294965248  ;;  %v1351_v0 = vld [vmem:[#allocation6 + $0x40] sm:$0xff]   ;;  %v1355_v4 = vld [vmem:[#allocation6 + $0x48] sm:$0xff]   ;;  %vm1554_vm0 = vmmov 0  }
  0x4b   :  { %v1352_v1 = vld [vmem:[#allocation6 + $0xc0] sm:$0xff]   ;;  %1099 = vmatprep.subr.bf16.mxu0 %v1351_v0  ;;  %v1356_v5 = vld [vmem:[#allocation6 + $0xc8] sm:$0xff]   ;;  %v1359_v8 = vld [vmem:[#allocation6 + $0x50] sm:$0xff]  }
  0x4c   :  { %v1353_v2 = vld [vmem:[#allocation6] sm:$0xff]   ;;  %1121 = vmatprep.subr.bf16.mxu1 %v1352_v1  ;;  %v1357_v6 = vld [vmem:[#allocation6 + $0x8] sm:$0xff]   ;;  %v1360_v9 = vld [vmem:[#allocation6 + $0xd0] sm:$0xff]  }
  0x4d   :  { %v1354_v3 = vld [vmem:[#allocation6 + $0x80] sm:$0xff]   ;;  %1100 = vmatpush3.bf16.msra.mxu0 %v1353_v2  ;;  %v1358_v7 = vld [vmem:[#allocation6 + $0x88] sm:$0xff]   ;;  %v1361_v10 = vld [vmem:[#allocation6 + $0x10] sm:$0xff]  }
  0x4e   :  { %1122 = vmatpush3.bf16.msra.mxu1 %v1354_v3  ;;  %1101 = vmatprep.subr.bf16.mxu0 %v1355_v4  ;;  %v1362_v11 = vld [vmem:[#allocation6 + $0x90] sm:$0xff]   ;;  %v1363_v12 = vld [vmem:[#allocation6 + $0x58] sm:$0xff]   ;;  %v1367_v16 = vld [vmem:[#allocation6 + $0x60] sm:$0xff]  }
  0x4f   :  { %1123 = vmatprep.subr.bf16.mxu1 %v1356_v5  ;;  %v1364_v13 = vld [vmem:[#allocation6 + $0xd8] sm:$0xff]   ;;  %v1368_v17 = vld [vmem:[#allocation6 + $0xe0] sm:$0xff]   ;;  %v1371_v20 = vld [vmem:[#allocation6 + $0x68] sm:$0xff]  }
  0x50   :  { %v1365_v14 = vld [vmem:[#allocation6 + $0x18] sm:$0xff]   ;;  %v1369_v18 = vld [vmem:[#allocation6 + $0x20] sm:$0xff]   ;;  %v1372_v21 = vld [vmem:[#allocation6 + $0xe8] sm:$0xff]  }
  0x51   :  { %1102 = vmatpush3.bf16.msra.mxu0 %v1357_v6  ;;  %v1366_v15 = vld [vmem:[#allocation6 + $0x98] sm:$0xff]   ;;  %v1370_v19 = vld [vmem:[#allocation6 + $0xa0] sm:$0xff]   ;;  %v1373_v22 = vld [vmem:[#allocation6 + $0x28] sm:$0xff]  }
  0x52   :  { %1124 = vmatpush3.bf16.msra.mxu1 %v1358_v7  ;;  %1103 = vmatprep.subr.bf16.mxu0 %v1359_v8  ;;  %v1374_v23 = vld [vmem:[#allocation6 + $0xa8] sm:$0xff]   ;;  %v1375_v24 = vld [vmem:[#allocation6 + $0x70] sm:$0xff]   ;;  %v1379_v28 = vld [vmem:[#allocation6 + $0x78] sm:$0xff]  }
  0x53   :  { %1125 = vmatprep.subr.bf16.mxu1 %v1360_v9  ;;  %v1376_v25 = vld [vmem:[#allocation6 + $0xf0] sm:$0xff]   ;;  %v1380_v29 = vld [vmem:[#allocation6 + $0xf8] sm:$0xff]   ;;  %v87_v32 = vld [vmem:[#allocation3] sm:$0xff] }
  0x54   :  { %v1377_v26 = vld [vmem:[#allocation6 + $0x30] sm:$0xff]   ;;  %v1381_v30 = vld [vmem:[#allocation6 + $0x38] sm:$0xff]   ;;  %v88_v33 = vld [vmem:[#allocation3 + $0x8] sm:$0xff]  ;;  %v1024_v34 = vcombine.low %v87_v32, %v87_v32  ;;  %v1025_v35 = vcombine.high %v87_v32, %v87_v32 }
  0x55   :  { %1104 = vmatpush3.bf16.msra.mxu0 %v1361_v10  ;;  %v1378_v27 = vld [vmem:[#allocation6 + $0xb0] sm:$0xff]   ;;  %v1382_v31 = vld [vmem:[#allocation6 + $0xb8] sm:$0xff]   ;;  %v1026_v36 = vcombine.low %v88_v33, %v88_v33  ;;  %v1027_v37 = vcombine.high %v88_v33, %v88_v33  ;;  %v1387_v38 = vld [vmem:[#allocation6 + $0x140] sm:$0xff]  }
  0x56   :  { %1126 = vmatpush3.bf16.msra.mxu1 %v1362_v11  ;;  %1105 = vmatprep.subr.bf16.mxu0 %v1363_v12  ;;  %v1388_v39 = vld [vmem:[#allocation6 + $0x1c0] sm:$0xff]   ;;  %v1391_v42 = vld [vmem:[#allocation6 + $0x148] sm:$0xff]   ;;  %v1395_v46 = vld [vmem:[#allocation6 + $0x150] sm:$0xff]  }
  0x57   :  { %1127 = vmatprep.subr.bf16.mxu1 %v1364_v13  ;;  %663 = vmatprep.mubr.bf16.mxu0 %v1025_v35  ;;  %v1389_v40 = vld [vmem:[#allocation6 + $0x100] sm:$0xff]   ;;  %v1392_v43 = vld [vmem:[#allocation6 + $0x1c8] sm:$0xff]   ;;  %v1396_v47 = vld [vmem:[#allocation6 + $0x1d0] sm:$0xff]  }
  0x58   :  { %703 = vmatprep.mubr.bf16.mxu1 %v1027_v37  ;;  %v1390_v41 = vld [vmem:[#allocation6 + $0x180] sm:$0xff]   ;;  %v1393_v44 = vld [vmem:[#allocation6 + $0x108] sm:$0xff]   ;;  %v1397_v48 = vld [vmem:[#allocation6 + $0x110] sm:$0xff]   ;;  %v1555_v37 = vmov 0.0  }
  0x59   :  { %1106 = vmatpush3.bf16.msra.mxu0 %v1365_v14  ;;  %v1394_v45 = vld [vmem:[#allocation6 + $0x188] sm:$0xff]   ;;  %v1398_v49 = vld [vmem:[#allocation6 + $0x190] sm:$0xff]   ;;  %v1399_v50 = vld [vmem:[#allocation6 + $0x158] sm:$0xff]  }
  0x5a   :  { %1128 = vmatpush3.bf16.msra.mxu1 %v1366_v15  ;;  %1107 = vmatprep.subr.bf16.mxu0 %v1367_v16  ;;  %v1400_v51 = vld [vmem:[#allocation6 + $0x1d8] sm:$0xff]   ;;  %v1403_v54 = vld [vmem:[#allocation6 + $0x160] sm:$0xff]   ;;  %v1407_v58 = vld [vmem:[#allocation6 + $0x168] sm:$0xff]   ;;  %v1553_v15 = vmov 0.0|0.0  }
  0x5b   :  { %1129 = vmatprep.subr.bf16.mxu1 %v1368_v17  ;;  %v1401_v52 = vld [vmem:[#allocation6 + $0x118] sm:$0xff]   ;;  %v1404_v55 = vld [vmem:[#allocation6 + $0x1e0] sm:$0xff]   ;;  %v1408_v59 = vld [vmem:[#allocation6 + $0x1e8] sm:$0xff]  }
  0x5c   :  { %v1402_v53 = vld [vmem:[#allocation6 + $0x198] sm:$0xff]   ;;  %v1405_v56 = vld [vmem:[#allocation6 + $0x120] sm:$0xff]   ;;  %v1409_v60 = vld [vmem:[#allocation6 + $0x128] sm:$0xff]  }
  0x5d   :  { %1108 = vmatpush3.bf16.msra.mxu0 %v1369_v18  ;;  %v1406_v57 = vld [vmem:[#allocation6 + $0x1a0] sm:$0xff]   ;;  %v1410_v61 = vld [vmem:[#allocation6 + $0x1a8] sm:$0xff]   ;;  %v1411_v62 = vld [vmem:[#allocation6 + $0x170] sm:$0xff]  }
  0x5e   :  { %1130 = vmatpush3.bf16.msra.mxu1 %v1370_v19  ;;  %1109 = vmatprep.subr.bf16.mxu0 %v1371_v20  ;;  %v1412_v63 = vld [vmem:[#allocation6 + $0x1f0] sm:$0xff]   ;;  %v1415_v2 = vld [vmem:[#allocation6 + $0x178] sm:$0xff]   ;;  %v808_v12 = vld [vmem:[#allocation8] sm:$0xff] }
  0x5f   :  { %1131 = vmatprep.subr.bf16.mxu1 %v1372_v21  ;;  %v1413_v0 = vld [vmem:[#allocation6 + $0x130] sm:$0xff]   ;;  %v1416_v3 = vld [vmem:[#allocation6 + $0x1f8] sm:$0xff]   ;;  %v809_v13 = vld [vmem:[#allocation8 + $0x8] sm:$0xff] }
  0x60   :  { %v1414_v1 = vld [vmem:[#allocation6 + $0x1b0] sm:$0xff]   ;;  %v1417_v4 = vld [vmem:[#allocation6 + $0x138] sm:$0xff]   ;;  %v1292_v16 = vpack.c.bf16 %v809_v13, %v808_v12  ;;  %v812_v19 = vld [vmem:[#allocation8 + $0x20] sm:$0xff] }
  0x61   :  { %1110 = vmatpush3.bf16.msra.mxu0 %v1373_v22  ;;  %v1418_v5 = vld [vmem:[#allocation6 + $0x1b8] sm:$0xff]   ;;  %v89_v6 = vld [vmem:[#allocation3 + $0x10] sm:$0xff]  ;;  %v813_v20 = vld [vmem:[#allocation8 + $0x28] sm:$0xff] }
  0x62   :  { %1132 = vmatpush3.bf16.msra.mxu1 %v1374_v23  ;;  %1111 = vmatprep.subr.bf16.mxu0 %v1375_v24  ;;  %v1028_v7 = vcombine.low %v89_v6, %v89_v6  ;;  %v1029_v8 = vcombine.high %v89_v6, %v89_v6  ;;  %v90_v9 = vld [vmem:[#allocation3 + $0x18] sm:$0xff]  ;;  %v810_v14 = vld [vmem:[#allocation8 + $0x10] sm:$0xff]  ;;  %v1298_v21 = vpack.c.bf16 %v813_v20, %v812_v19  ;;  %v821_v32 = vld [vmem:[#allocation8 + $0x68] sm:$0xff] }
  0x63   :  { %1133 = vmatprep.subr.bf16.mxu1 %v1376_v25  ;;  %v1030_v10 = vcombine.low %v90_v9, %v90_v9  ;;  %v1031_v11 = vcombine.high %v90_v9, %v90_v9  ;;  %v811_v17 = vld [vmem:[#allocation8 + $0x18] sm:$0xff]  ;;  %v814_v22 = vld [vmem:[#allocation8 + $0x30] sm:$0xff]  ;;  %v816_v25 = vld [vmem:[#allocation8 + $0x40] sm:$0xff] }
  0x64   :  { %v1295_v18 = vpack.c.bf16 %v811_v17, %v810_v14  ;;  %v815_v23 = vld [vmem:[#allocation8 + $0x38] sm:$0xff]  ;;  %v1096_v17 = vld [vmem:[%s1684_s2] ss:$0 sm:$0xff] }
  0x65   :  { %1112 = vmatpush3.bf16.msra.mxu0 %v1377_v26  ;;  %v1301_v24 = vpack.c.bf16 %v815_v23, %v814_v22  ;;  %v817_v26 = vld [vmem:[#allocation8 + $0x48] sm:$0xff]  ;;  %v823_v35 = vld [vmem:[#allocation8 + $0x78] sm:$0xff]  ;;  %v918_v22 = vld [vmem:[#allocation9 + $0x70] sm:$0xff] }
  0x66   :  { %1134 = vmatpush3.bf16.msra.mxu1 %v1378_v27  ;;  %1113 = vmatprep.subr.bf16.mxu0 %v1379_v28  ;;  %v1304_v27 = vpack.c.bf16 %v817_v26, %v816_v25  ;;  %v818_v28 = vld [vmem:[#allocation8 + $0x50] sm:$0xff]  ;;  %v919_v23 = vld [vmem:[#allocation9 + $0x78] sm:$0xff]  ;;  %v1097_v25 = vld [vmem:[%s1686_s4] ss:$0 sm:$0xff]  ;;  %s1556_s4 = smov [#allocation11]  }
  0x67   :  { %1135 = vmatprep.subr.bf16.mxu1 %v1380_v29  ;;  %v819_v29 = vld [vmem:[#allocation8 + $0x58] sm:$0xff]  ;;  %s1013_s30 = sshll.u32 %s1556_s4, 4  ;;  %s1014_s30 = int_to_ptr.vmem [resolvable:$true] %s1013_s30 }
  0x68   :  { %s1515_s8 = scalar_lea.vmem %s1014_s30, 128  ;;  %p1520_p5 = scmp.lt.s32.totalorder %s1014_s30, %s1014_s30 }
  0x69   :  { %1114 = vmatpush3.bf16.msra.mxu0 %v1381_v30  ;;  %v1307_v30 = vpack.c.bf16 %v819_v29, %v818_v28  ;;  %p1516_p4 = scmp.ne.s32.totalorder %s1014_s30, %s1515_s8  ;;  %p1521_p6 = scmp.lt.s32.totalorder %s1515_s8, %s1515_s8 }
  0x6a   :  { %1136 = vmatpush3.bf16.msra.mxu1 %v1382_v31  ;;  %1143 = vmatprep.subr.bf16.mxu0 %v1387_v38  ;;  %v820_v31 = vld [vmem:[#allocation8 + $0x60] sm:$0xff] }
  0x6b   :  { %1165 = vmatprep.subr.bf16.mxu1 %v1388_v39  ;;  %v1310_v33 = vpack.c.bf16 %v821_v32, %v820_v31  ;;  %v904_v38 = vld [vmem:[#allocation9] sm:$0xff]  ;;  %v905_v39 = vld [vmem:[#allocation9 + $0x8] sm:$0xff]  ;;  %p1522_p7 = por %p1521_p6, %p1520_p5 }
  0x6c   :  { %664 = vmatmul.mubr.bf16.vlgmr.msra.gmra.mrb[0].mxu0 %v1024_v34  ;;  %v822_v34 = vld [vmem:[#allocation8 + $0x70] sm:$0xff]  ;;  %v1098_v31 = vld [vmem:[%s1688_s6] ss:$0 sm:$0xff] }
  0x6d   :  { %704 = vmatmul.mubr.bf16.vlgmr.msra.gmra.mrb[0].mxu1 %v1026_v36  ;;  %1144 = vmatpush3.bf16.msra.mxu0 %v1389_v40  ;;  %v1313_v36 = vpack.c.bf16 %v823_v35, %v822_v34  ;;  %v906_v40 = vld [vmem:[#allocation9 + $0x10] sm:$0xff]  ;;  %p1523_p8 = pnand %p1522_p7, %p1516_p4 }
  0x6e   :  { %1166 = vmatpush3.bf16.msra.mxu1 %v1390_v41  ;;  %1145 = vmatprep.subr.bf16.mxu0 %v1391_v42  ;;  %v1316_v41 = vpack.c.bf16 %v905_v39, %v904_v38  ;;  %v907_v42 = vld [vmem:[#allocation9 + $0x18] sm:$0xff] }
  0x6f   :  { %1167 = vmatprep.subr.bf16.mxu1 %v1392_v43  ;;  %743 = vmatprep.mubr.bf16.mxu0 %v1029_v8  ;;  %v1319_v43 = vpack.c.bf16 %v907_v42, %v906_v40 }
  0x70   :  { %783 = vmatprep.mubr.bf16.mxu1 %v1031_v11 }
  0x71   :  { %1146 = vmatpush3.bf16.msra.mxu0 %v1393_v44  ;;  %v908_v44 = vld [vmem:[#allocation9 + $0x20] sm:$0xff] }
  0x72   :  { %1168 = vmatpush3.bf16.msra.mxu1 %v1394_v45  ;;  %1147 = vmatprep.subr.bf16.mxu0 %v1395_v46  ;;  %v909_v45 = vld [vmem:[#allocation9 + $0x28] sm:$0xff] }
  0x73   :  { %1169 = vmatprep.subr.bf16.mxu1 %v1396_v47  ;;  %v1322_v46 = vpack.c.bf16 %v909_v45, %v908_v44  ;;  %v910_v47 = vld [vmem:[#allocation9 + $0x30] sm:$0xff] }
  0x75   :  { %1148 = vmatpush3.bf16.msra.mxu0 %v1397_v48  ;;  %v911_v48 = vld [vmem:[#allocation9 + $0x38] sm:$0xff] }
  0x76   :  { %1170 = vmatpush3.bf16.msra.mxu1 %v1398_v49  ;;  %1149 = vmatprep.subr.bf16.mxu0 %v1399_v50  ;;  %v1325_v49 = vpack.c.bf16 %v911_v48, %v910_v47  ;;  %v912_v50 = vld [vmem:[#allocation9 + $0x40] sm:$0xff] }
  0x77   :  { %1171 = vmatprep.subr.bf16.mxu1 %v1400_v51  ;;  %v913_v51 = vld [vmem:[#allocation9 + $0x48] sm:$0xff] }
  0x79   :  { %1150 = vmatpush3.bf16.msra.mxu0 %v1401_v52  ;;  %v1328_v52 = vpack.c.bf16 %v913_v51, %v912_v50 }
  0x7a   :  { %1172 = vmatpush3.bf16.msra.mxu1 %v1402_v53  ;;  %1151 = vmatprep.subr.bf16.mxu0 %v1403_v54  ;;  %v914_v53 = vld [vmem:[#allocation9 + $0x50] sm:$0xff]  ;;  %v915_v54 = vld [vmem:[#allocation9 + $0x58] sm:$0xff] }
  0x7b   :  { %1173 = vmatprep.subr.bf16.mxu1 %v1404_v55  ;;  %v1331_v55 = vpack.c.bf16 %v915_v54, %v914_v53 }
  0x7d   :  { %1152 = vmatpush3.bf16.msra.mxu0 %v1405_v56  ;;  %v916_v56 = vld [vmem:[#allocation9 + $0x60] sm:$0xff] }
  0x7e   :  { %1174 = vmatpush3.bf16.msra.mxu1 %v1406_v57  ;;  %1153 = vmatprep.subr.bf16.mxu0 %v1407_v58  ;;  %v917_v57 = vld [vmem:[#allocation9 + $0x68] sm:$0xff] }
  0x7f   :  { %1175 = vmatprep.subr.bf16.mxu1 %v1408_v59  ;;  %v1334_v58 = vpack.c.bf16 %v917_v57, %v916_v56 }
  0x81   :  { %1154 = vmatpush3.bf16.msra.mxu0 %v1409_v60 }
  0x82   :  { %1176 = vmatpush3.bf16.msra.mxu1 %v1410_v61  ;;  %1155 = vmatprep.subr.bf16.mxu0 %v1411_v62 }
  0x83   :  { %1177 = vmatprep.subr.bf16.mxu1 %v1412_v63 }
  0x85   :  { %1156 = vmatpush3.bf16.msra.mxu0 %v1413_v0 }
  0x86   :  { %1178 = vmatpush3.bf16.msra.mxu1 %v1414_v1  ;;  %1157 = vmatprep.subr.bf16.mxu0 %v1415_v2 }
  0x87   :  { %1179 = vmatprep.subr.bf16.mxu1 %v1416_v3 }
  0x89   :  { %1158 = vmatpush3.bf16.msra.mxu0 %v1417_v4 }
  0x8a   :  { %1180 = vmatpush3.bf16.msra.mxu1 %v1418_v5  ;;  %1291 = vmatprep.subr.bf16.mxu0 %v1553_v15 }
  0x8b   :  { %1315 = vmatprep.subr.bf16.mxu1 %v1553_v15 }
  0x8c   :  { %744 = vmatmul.mubr.bf16.vlgmr.msra.gmra.mrb[4].mxu0 %v1028_v7 }
  0x8d   :  { %784 = vmatmul.mubr.bf16.vlgmr.msra.gmra.mrb[4].mxu1 %v1030_v10  ;;  %1293 = vmatpush3.bf16.msra.mxu0 %v1292_v16 }
  0x8e   :  { %1294 = vmatprep.subr.bf16.mxu0 %v1553_v15  ;;  %1253 = vmatprep.mubr.msk.f32.mxu0 %vm1554_vm0, %v1555_v37 }
  0x8f   :  { %1288 = vmatprep.mubr.msk.f32.mxu1 %vm1554_vm0, %v1555_v37  ;;  %1317 = vmatpush3.bf16.msra.mxu1 %v1316_v41 }
  0x90   :  { %1318 = vmatprep.subr.bf16.mxu1 %v1553_v15 }
  0x91   :  { %1296 = vmatpush3.bf16.msra.mxu0 %v1295_v18 }
  0x92   :  { %1297 = vmatprep.subr.bf16.mxu0 %v1553_v15 }
  0x93   :  { %1320 = vmatpush3.bf16.msra.mxu1 %v1319_v43 }
  0x94   :  { %1321 = vmatprep.subr.bf16.mxu1 %v1553_v15 }
  0x95   :  { %1299 = vmatpush3.bf16.msra.mxu0 %v1298_v21 }
  0x96   :  { %1300 = vmatprep.subr.bf16.mxu0 %v1553_v15 }
  0x97   :  { %1323 = vmatpush3.bf16.msra.mxu1 %v1322_v46 }
  0x98   :  { %1324 = vmatprep.subr.bf16.mxu1 %v1553_v15 }
  0x99   :  { %1302 = vmatpush3.bf16.msra.mxu0 %v1301_v24  ;;  %v1337_v24 = vpack.c.bf16 %v919_v23, %v918_v22 }
  0x9a   :  { %1303 = vmatprep.subr.bf16.mxu0 %v1553_v15 }
  0x9b   :  { %1326 = vmatpush3.bf16.msra.mxu1 %v1325_v49 }
  0x9c   :  { %1327 = vmatprep.subr.bf16.mxu1 %v1553_v15 }
  0x9d   :  { %1305 = vmatpush3.bf16.msra.mxu0 %v1304_v27 }
  0x9e   :  { %1306 = vmatprep.subr.bf16.mxu0 %v1553_v15 }
  0x9f   :  { %1329 = vmatpush3.bf16.msra.mxu1 %v1328_v52 }
  0xa0   :  { %1330 = vmatprep.subr.bf16.mxu1 %v1553_v15 }
  0xa1   :  { %1308 = vmatpush3.bf16.msra.mxu0 %v1307_v30 }
  0xa2   :  { %1309 = vmatprep.subr.bf16.mxu0 %v1553_v15 }
  0xa3   :  { %1332 = vmatpush3.bf16.msra.mxu1 %v1331_v55 }
  0xa4   :  { %1333 = vmatprep.subr.bf16.mxu1 %v1553_v15 }
  0xa5   :  { %1311 = vmatpush3.bf16.msra.mxu0 %v1310_v33 }
  0xa6   :  { %1312 = vmatprep.subr.bf16.mxu0 %v1553_v15 }
  0xa7   :  { %1335 = vmatpush3.bf16.msra.mxu1 %v1334_v58 }
  0xa8   :  { %1336 = vmatprep.subr.bf16.mxu1 %v1553_v15 }
  0xa9   :  { %1314 = vmatpush3.bf16.msra.mxu0 %v1313_v36 }
  0xab   :  { %1338 = vmatpush3.bf16.msra.mxu1 %v1337_v24 }
 0x13f   :  { %v1115_v59 = vpop.f32.mrb[0].mxu0 }
 0x140   :  { %v1137_v60 = vpop.f32.mrb[0].mxu1  ;;  %v1116_v61 = vpop.f32.mrb[1].mxu0 }
 0x141   :  { %v1138_v62 = vpop.f32.mrb[1].mxu1  ;;  %v1117_v63 = vadd.f32 %v1116_v61, %v1115_v59  ;;  %v1118_v1 = vpop.f32.mrb[2].mxu0 }
 0x142   :  { %v1139_v0 = vadd.f32 %v1138_v62, %v1137_v60  ;;  %v1140_v2 = vpop.f32.mrb[2].mxu1  ;;  %v1119_v3 = vpop.f32.mrb[3].mxu0 }
 0x143   :  { %v1141_v4 = vpop.f32.mrb[3].mxu1 }
 0x144   :  { %v706_v5 = vadd.f32 %v1139_v0, %v1117_v63 }
 0x15f   :  { %v1159_v6 = vpop.f32.mrb[4].mxu0 }
 0x160   :  { %v1181_v7 = vpop.f32.mrb[4].mxu1  ;;  %v1160_v8 = vpop.f32.mrb[5].mxu0 }
 0x161   :  { %v1182_v9 = vpop.f32.mrb[5].mxu1  ;;  %v1161_v10 = vadd.f32 %v1160_v8, %v1159_v6  ;;  %v1162_v12 = vpop.f32.mrb[6].mxu0 }
 0x162   :  { %v1183_v11 = vadd.f32 %v1182_v9, %v1181_v7  ;;  %v1184_v13 = vpop.f32.mrb[6].mxu1  ;;  %v1163_v14 = vpop.f32.mrb[7].mxu0 }
 0x163   :  { %v1185_v15 = vpop.f32.mrb[7].mxu1  ;;  %v746_v16 = vadd.f32 %v1161_v10, %v706_v5 }
 0x165   :  { %v786_v18 = vadd.f32 %v1183_v11, %v746_v16 }
 0x167   :  { %v804_v19 = vadd.f32 %v1096_v17, %v786_v18 }
 0x169   :  { %vm805_vm1 = vcmp.gt.f32.partialorder %v804_v19, 0.0  ;;  %v806_v20 = vmul.f32 0.01, %v804_v19 }
 0x16b   :  { %v807_v21 = vsel %vm805_vm1, %v804_v19, %v806_v20 }
 0x16c   :  { %1254 = vmatmul.mubr.f32.vlgmr.msra.gmra.mrb[8].mxu0 %v807_v21 }
 0x23f   :  { %v897_v26 = vpop.f32.mrb[8].mxu0 }
 0x240   :  { %v898_v27 = vadd.f32 %v1097_v25, %v897_v26  ;;  %v1255_v28 = vpop.f32.mrb[9].mxu0 }
 0x242   :  { %vm901_vm2 = vcmp.gt.f32.partialorder %v898_v27, 0.0  ;;  %v902_v29 = vmul.f32 0.01, %v898_v27 }
 0x244   :  { %v903_v30 = vsel %vm901_vm2, %v898_v27, %v902_v29 }
 0x245   :  { %1289 = vmatmul.mubr.f32.vlgmr.msra.gmra.mrb[8].mxu1 %v903_v30 }
 0x318   :  { %v993_v32 = vpop.f32.mrb[8].mxu1 }
 0x319   :  { %v994_v33 = vadd.f32 %v1098_v31, %v993_v32  ;;  %v1290_v34 = vpop.f32.mrb[9].mxu1 }
 0x31b   :  { %v997_v35 = vand.u32 2147483647, %v994_v33  ;;  %vm1001_vm3 = vcmp.ge.f32.partialorder %v994_v33, 0.0 }
 0x31d   :  { %v998_v36 = vsub.f32 0.0, %v997_v35 }
 0x31f   :  { %v999_v37 = vmul.f32 1.442695, %v998_v36 }
 0x321   :  { %1423 = vpow2.f32 %v999_v37 }
 0x32b   :  { %v1424_v38 = vpop.eup %1423 }
 0x32c   :  { %v1003_v39 = vadd.f32 1.0, %v1424_v38  ;;  %v1002_v41 = vsel %vm1001_vm3, 1.0, %v1424_v38 }
 0x32e   :  { %1425 = vrcp.f32 %v1003_v39 }
 0x338   :  { %v1426_v40 = vpop.eup %1425 }
 0x339   :  { %v1005_v42 = vmul.f32 %v1426_v40, %v1002_v41 }
 0x33b   :  { %1006 = vst [vmem:[#allocation11] sm:$0xff] %v1005_v42 }
 0x33c   :  { %1526 = shalt.err (!%p1523_p8)
}
 0x33d   :  { %s1527_s10 = scalar_lea.hbm %s1689_s7, 128 }
 0x33e   :  { %p1528_p9 = scmp.ne.s32.totalorder %s1689_s7, %s1527_s10  ;;  %p1531_p10 = scmp.lt.u32.totalorder %s1527_s10, %s1689_s7 }
 0x340   :  { %p1533_p11 = pnand %p1531_p10, %p1528_p9 }
 0x342   :  { %1536 = shalt.err (!%p1533_p11)
}
 0x343   :  { %1016 = dma.vmem_to_hbm [thread:$0]  %s1014_s30, 128, %s1689_s7, [#allocation5]  }
 0x344   :  { %1543 = dma.done.wait [#allocation5], 128  }
 0x345   :  { %1544 = vsyncadd [#allocation5], 4294967168 }
 0x346   :  { %1020 = vsyncpa [#allocation4], 1 }
 0x347   :  { %1021 = vsyncpa [#allocation7], 1 }
 0x348   :  { %1022 = vsyncpa [#allocation10], 1 }
 0x349   :  { %1023 = vsyncpa [#allocation5], 1 }

</bundles_post_ra>
